<compile_context>
chip_gen: v5e
topology: v5e:2x2
jax: 0.10.0
libtpu: 0.0.40
codegen_flags: <defaults>
</compile_context>

<pallas_src>
import functools

import jax
import jax.numpy as jnp
from jax.experimental import pallas as pl
from jax.experimental.pallas import tpu as pltpu

F_DIM = 10    # logical output features (nn.Linear(r_dim, f_dim))
R_DIM = 100   # logical input features


def _cdiv(a, b):
    return -(-a // b)


def _round_up(x, m):
    return _cdiv(x, m) * m


def _linear_kernel(r_ref, w_ref, b_ref, o_ref):
    # (TB, 100) @ (100, 10) on the MXU with f32 accumulation; bias add on the VPU.
    acc = jnp.dot(r_ref[...], w_ref[...], preferred_element_type=jnp.float32)
    o_ref[...] = (acc + b_ref[...]).astype(o_ref.dtype)


@functools.partial(jax.jit, static_argnames=("tb", "core_parallel"))
def _forward_pallas(r, w, b, *, tb=1024, core_parallel=True):
    """Pallas path: x = r @ w.T + b, batch-tiled, no feature-dim padding anywhere."""
    B, r_dim = r.shape
    f_dim = w.shape[0]

    # Tile the batch without overshooting: B = k*tb + 1 no longer pads to (k+1)*tb
    # rows of work; the last block may be ragged (Pallas masks OOB reads/writes).
    num_tiles = _cdiv(B, tb)
    TB = _round_up(_cdiv(B, num_tiles), 8)
    grid = (_cdiv(B, TB),)

    w_t = w.T.astype(jnp.float32)                     # (r_dim, f_dim): 4 KiB, VMEM-resident
    b_2d = b.astype(jnp.float32).reshape(1, f_dim)

    if core_parallel:
        # v7x: split batch tiles across the two TensorCores.  No-op on v5e/v6e.
        sem = getattr(pltpu, "CORE_PARALLEL", "parallel")
    else:
        sem = "parallel"

    return pl.pallas_call(
        _linear_kernel,
        out_shape=jax.ShapeDtypeStruct((B, f_dim), jnp.float32),
        grid=grid,
        in_specs=[
            # Activations: tiled over batch, full (ragged) K=100 in the last dim.
            pl.BlockSpec((TB, r_dim), lambda i: (i, 0)),
            # Weight / bias: resident across all batch tiles (constant index_map).
            pl.BlockSpec((r_dim, f_dim), lambda i: (0, 0)),
            pl.BlockSpec((1, f_dim), lambda i: (0, 0)),
        ],
        out_specs=pl.BlockSpec((TB, f_dim), lambda i: (i, 0)),
        compiler_params=pltpu.CompilerParams(dimension_semantics=(sem,)),
        cost_estimate=pl.CostEstimate(
            flops=2 * B * r_dim * f_dim,
            transcendentals=0,
            bytes_accessed=(B * r_dim * 4        # r (f32, read once, unpadded)
                            + r_dim * f_dim * 4  # w
                            + f_dim * 4          # b
                            + B * f_dim * 4),    # out (f32, 10 cols, no padding)
        ),
    )(r, w_t, b_2d)


@jax.jit
def _forward_xla(r, w, b):
    return r @ w.T + b


def reverse_network_forward(r, w, b, *, tb=1024, min_pallas_batch=1024):
    """ReverseNetwork.forward: x = Linear(r_dim -> f_dim)(r).

    r: (B, R_DIM) f32; w: (F_DIM, R_DIM) f32 (PyTorch layout); b: (F_DIM,) f32.
    """
    if r.shape[0] < min_pallas_batch:
        # Small-batch fast path: Pallas dispatch + fixed per-tile costs dominate
        # below ~1K rows; XLA's fused dot has lower latency there.
        return _forward_xla(r, w, b)
    try:
        return _forward_pallas(r, w, b, tb=tb, core_parallel=True)
    except Exception:
        # Older toolchains may reject CORE_PARALLEL dimension semantics.
        return _forward_pallas(r, w, b, tb=tb, core_parallel=False)


def init_params(key):
    """Deterministic init mimicking nn.Linear default (U[-1/sqrt(in), 1/sqrt(in)])."""
    k_w, k_b = jax.random.split(key)
    bound = 1.0 / jnp.sqrt(jnp.float32(R_DIM))
    # PyTorch layout: weight (f_dim, r_dim), bias (f_dim,)
    w = jax.random.uniform(k_w, (F_DIM, R_DIM), jnp.float32, -bound, bound)
    b = jax.random.uniform(k_b, (F_DIM,), jnp.float32, -bound, bound)
    # TODO(synk): linear2/linear3 (128x128, 128x10), tanh, relu exist in __init__
    # but are unused in forward; omitted from the kernel by design.
    return w, b


if __name__ == "__main__":
    key = jax.random.PRNGKey(0)
    k_params, k_in1, k_in2 = jax.random.split(key, 3)

    w, b = init_params(k_params)

    # --- Pallas path: multi-tile grid with a ragged final block ---------------
    #     (B=300, tb=128 -> TB=104, grid=3, last block partially out of bounds).
    B1 = 300
    r1 = jax.random.normal(k_in1, (B1, R_DIM), jnp.float32)
    out1 = reverse_network_forward(r1, w, b, tb=128, min_pallas_batch=0)
    out1 = jax.block_until_ready(out1)
    assert out1.shape == (B1, F_DIM)
    ref1 = r1 @ w.T + b
    assert jnp.allclose(out1, ref1, atol=3e-2, rtol=3e-2), float(
        jnp.max(jnp.abs(out1 - ref1)))

    # --- Pallas path: single resident tile (B=256, default tb) ----------------
    B2 = 256
    r2 = jax.random.normal(k_in2, (B2, R_DIM), jnp.float32)
    out2 = reverse_network_forward(r2, w, b, min_pallas_batch=0)
    out2 = jax.block_until_ready(out2)
    assert out2.shape == (B2, F_DIM)
    ref2 = r2 @ w.T + b
    assert jnp.allclose(out2, ref2, atol=3e-2, rtol=3e-2)

    # --- Small-batch fast path (skips Pallas by design, per perf review) ------
    out3 = reverse_network_forward(r2[:8], w, b)
    out3 = jax.block_until_ready(out3)
    assert out3.shape == (8, F_DIM)
    assert jnp.allclose(out3, ref2[:8], atol=3e-2, rtol=3e-2)

    print("KERNEL_OK")
</pallas_src>

<mosaic_0001>
module attributes {stable_mosaic.version = 11 : i64} {
  func.func @_linear_kernel(%arg0: i32, %arg1: memref<104x100xf32, #tpu.memory_space<vmem>>, %arg2: memref<100x10xf32, #tpu.memory_space<vmem>>, %arg3: memref<1x10xf32, #tpu.memory_space<vmem>>, %arg4: memref<104x10xf32, #tpu.memory_space<vmem>>) attributes {dimension_semantics = [#tpu.dimension_semantics<core_parallel>], iteration_bounds = array<i64: 3>, scalar_prefetch = 0 : i64, scratch_operands = 0 : i64, tpu.core_type = #tpu.core_type<tc>, window_params = [{transform_indices = @transform_0, window_bounds = array<i64: 104, 100>}, {pipeline_mode = #tpu.pipeline_mode<synchronous>, transform_indices = @transform_1, window_bounds = array<i64: 100, 10>}, {pipeline_mode = #tpu.pipeline_mode<synchronous>, transform_indices = @transform_2, window_bounds = array<i64: 1, 10>}, {transform_indices = @transform_3, window_bounds = array<i64: 104, 10>}]} {
    %c0 = arith.constant 0 : index
    %c0_0 = arith.constant 0 : index
    %0 = vector.load %arg1[%c0, %c0_0] : memref<104x100xf32, #tpu.memory_space<vmem>>, vector<104x100xf32>
    %c0_1 = arith.constant 0 : index
    %c0_2 = arith.constant 0 : index
    %1 = vector.load %arg2[%c0_1, %c0_2] : memref<100x10xf32, #tpu.memory_space<vmem>>, vector<100x10xf32>
    %cst = arith.constant dense<0.000000e+00> : vector<104x10xf32>
    %2 = tpu.matmul %0, %1, %cst {dimension_numbers = #tpu.dot_dimension_numbers<[1], [0], [0], [1], [0, 0, 1, 1], [], []>} : vector<104x100xf32>, vector<100x10xf32>, vector<104x10xf32> -> vector<104x10xf32>
    %c0_3 = arith.constant 0 : index
    %c0_4 = arith.constant 0 : index
    %3 = vector.load %arg3[%c0_3, %c0_4] : memref<1x10xf32, #tpu.memory_space<vmem>>, vector<1x10xf32>
    %4 = vector.broadcast %3 : vector<1x10xf32> to vector<104x10xf32>
    %5 = arith.addf %2, %4 : vector<104x10xf32>
    %c0_5 = arith.constant 0 : index
    %c0_6 = arith.constant 0 : index
    %6 = vector.load %arg4[%c0_5, %c0_6] : memref<104x10xf32, #tpu.memory_space<vmem>>, vector<104x10xf32>
    tpu.vector_store %arg4[%c0_5, %c0_6], %5 {strides = array<i32>} : memref<104x10xf32, #tpu.memory_space<vmem>>, vector<104x10xf32>,
    return
  }
  func.func @transform_0(%arg0: i32) -> (i32, i32) {
    %c0_i32 = arith.constant 0 : i32
    %c0_i32_0 = arith.constant 0 : i32
    return %arg0, %c0_i32 : i32, i32
  }
  func.func @transform_1(%arg0: i32) -> (i32, i32) {
    %c0_i32 = arith.constant 0 : i32
    %c0_i32_0 = arith.constant 0 : i32
    %c0_i32_1 = arith.constant 0 : i32
    return %c0_i32, %c0_i32_0 : i32, i32
  }
  func.func @transform_2(%arg0: i32) -> (i32, i32) {
    %c0_i32 = arith.constant 0 : i32
    %c0_i32_0 = arith.constant 0 : i32
    %c0_i32_1 = arith.constant 0 : i32
    return %c0_i32, %c0_i32_0 : i32, i32
  }
  func.func @transform_3(%arg0: i32) -> (i32, i32) {
    %c0_i32 = arith.constant 0 : i32
    %c0_i32_0 = arith.constant 0 : i32
    return %arg0, %c0_i32 : i32, i32
  }
}

module attributes {stable_mosaic.version = 11 : i64} {
  func.func @_linear_kernel(%arg0: i32, %arg1: memref<104x100xf32, #tpu.memory_space<vmem>>, %arg2: memref<100x10xf32, #tpu.memory_space<vmem>>, %arg3: memref<1x10xf32, #tpu.memory_space<vmem>>, %arg4: memref<104x10xf32, #tpu.memory_space<vmem>>) attributes {dimension_semantics = [#tpu.dimension_semantics<parallel>], iteration_bounds = array<i64: 3>, scalar_prefetch = 0 : i64, scratch_operands = 0 : i64, tpu.core_type = #tpu.core_type<tc>, window_params = [{transform_indices = @transform_0, window_bounds = array<i64: 104, 100>}, {pipeline_mode = #tpu.pipeline_mode<synchronous>, transform_indices = @transform_1, window_bounds = array<i64: 100, 10>}, {pipeline_mode = #tpu.pipeline_mode<synchronous>, transform_indices = @transform_2, window_bounds = array<i64: 1, 10>}, {transform_indices = @transform_3, window_bounds = array<i64: 104, 10>}]} {
    %c0 = arith.constant 0 : index
    %c0_0 = arith.constant 0 : index
    %0 = vector.load %arg1[%c0, %c0_0] : memref<104x100xf32, #tpu.memory_space<vmem>>, vector<104x100xf32>
    %c0_1 = arith.constant 0 : index
    %c0_2 = arith.constant 0 : index
    %1 = vector.load %arg2[%c0_1, %c0_2] : memref<100x10xf32, #tpu.memory_space<vmem>>, vector<100x10xf32>
    %cst = arith.constant dense<0.000000e+00> : vector<104x10xf32>
    %2 = tpu.matmul %0, %1, %cst {dimension_numbers = #tpu.dot_dimension_numbers<[1], [0], [0], [1], [0, 0, 1, 1], [], []>} : vector<104x100xf32>, vector<100x10xf32>, vector<104x10xf32> -> vector<104x10xf32>
    %c0_3 = arith.constant 0 : index
    %c0_4 = arith.constant 0 : index
    %3 = vector.load %arg3[%c0_3, %c0_4] : memref<1x10xf32, #tpu.memory_space<vmem>>, vector<1x10xf32>
    %4 = vector.broadcast %3 : vector<1x10xf32> to vector<104x10xf32>
    %5 = arith.addf %2, %4 : vector<104x10xf32>
    %c0_5 = arith.constant 0 : index
    %c0_6 = arith.constant 0 : index
    %6 = vector.load %arg4[%c0_5, %c0_6] : memref<104x10xf32, #tpu.memory_space<vmem>>, vector<104x10xf32>
    tpu.vector_store %arg4[%c0_5, %c0_6], %5 {strides = array<i32>} : memref<104x10xf32, #tpu.memory_space<vmem>>, vector<104x10xf32>,
    return
  }
  func.func @transform_0(%arg0: i32) -> (i32, i32) {
    %c0_i32 = arith.constant 0 : i32
    %c0_i32_0 = arith.constant 0 : i32
    return %arg0, %c0_i32 : i32, i32
  }
  func.func @transform_1(%arg0: i32) -> (i32, i32) {
    %c0_i32 = arith.constant 0 : i32
    %c0_i32_0 = arith.constant 0 : i32
    %c0_i32_1 = arith.constant 0 : i32
    return %c0_i32, %c0_i32_0 : i32, i32
  }
  func.func @transform_2(%arg0: i32) -> (i32, i32) {
    %c0_i32 = arith.constant 0 : i32
    %c0_i32_0 = arith.constant 0 : i32
    %c0_i32_1 = arith.constant 0 : i32
    return %c0_i32, %c0_i32_0 : i32, i32
  }
  func.func @transform_3(%arg0: i32) -> (i32, i32) {
    %c0_i32 = arith.constant 0 : i32
    %c0_i32_0 = arith.constant 0 : i32
    return %arg0, %c0_i32 : i32, i32
  }
}

</mosaic_0001>

<bundles_post_ra>
// kernel: _forward_pallas.1
= control target key start
LH: loop header
LB: loop body
LE: loop exit
PB: predicated region body
PF: predicated region fallthrough
CT: control target
= control target key end

     0   :  { %8 = vsyncpa [#allocation3], 0  ;;  %s1267_s0 = inlined_call_operand.hbm [shape: f32[300,100], index: 0, kind: input, shape index: {}]   ;;  %s1268_s1 = inlined_call_operand.vmem [shape: f32[100,10], index: 1, kind: input, shape index: {}]   ;;  %s1269_s2 = inlined_call_operand.vmem [shape: f32[1,10], index: 2, kind: input, shape index: {}]   ;;  %s1270_s3 = inlined_call_operand.vmem [shape: f32[300,10], index: 3, kind: output, shape index: {}]  }
   0x1   :  { %10 = vsyncpa [#allocation3 + $0x1], 0  ;;  %s972_s12 = smov 0   ;;  %s974_s13 = smov 0  }
   0x2   :  { %s976_s14 = smov 0   ;;  %s978_s15 = smov 0  }
   0x3 LB: > { %s991_s16 = sadd.s32 4294967295, %s915_s15   ;;  %s994_s17 = sadd.s32 1, %s915_s15   ;;  %s915_s15 = sphi %s978_s15, %s1282_s15   ;;  %s911_s14 = sphi %s976_s14, %s1281_s14   ;;  %s907_s13 = sphi %s974_s13, %s1280_s13   ;;  %s903_s12 = sphi %s972_s12, %s1279_s12  }
   0x4   : > { %s20_s18 = ssub.s32 %s915_s15, %s994_s17  ;;  %s23_s19 = sadd.s32 1, %s911_s14 }
   0x5   : > { %p21_p0 = scmp.eq.s32.totalorder %s20_s18, 0  ;;  %p30_p1 = scmp.ne.s32.totalorder %s911_s14, %s907_s13 }
   0x6   : > { %p31_p2 = scmp.eq.s32.totalorder %s915_s15, 0  ;;  %p36_p3 = scmp.ne.s32.totalorder %s907_s13, %s903_s12 }
   0x7   : > { %s1004_s20 = scalar_select %p21_p0, %s911_s14, %s23_s19  }
   0x8   : > { %p32_p4 = por %p31_p2, %p30_p1  ;;  %p37_p5 = scmp.eq.s32.totalorder %s991_s16, 0 }
   0x9   : > { %p102_p6 = scmp.eq.s32.totalorder %s991_s16, 2  ;;  %p627_p9 = scmp.ge.s32.totalorder %s915_s15, 3 }
   0xa   : > { %p1008_p7 = por %p37_p5, %p36_p3 }
   0xb   : > { %p1012_p8 = por %p102_p6, %p30_p1  ;;  %130 = sbr.rel (%p627_p9) target bundleno = 54 (0x36), region = 24 }
  0x10   : > { %133 = sbr.rel (!%p32_p4) target bundleno = 54 (0x36), region = 28  ;;  %s134_s23 = sand.u32 (%p32_p4), 1, %s911_s14  }
  0x11   : > { %s139_s24 = smul.u32 (%p32_p4), 13, %s915_s15  ;;  %s1022_s30 = scalar_lea.sflag (%p32_p4), [#allocation3], %s134_s23 }
  0x12   : > { %s701_s25 = smul.u32 (%p32_p4), 104, %s134_s23 }
  0x13   : > { %s140_s26 = ssub.s32 (%p32_p4), 38, %s139_s24 }
  0x14   : > { %p141_p10 = scmp.lt.s32.totalorder (%p32_p4), %s140_s26, 13  ;;  %s138_s4 = scalar_lea.vmem (%p32_p4), [#allocation2], %s701_s25 }
  0x16   : > { %s1284_s26 = smov (!%p141_p10, %s140_s26), 13 }
  0x17   : > { %s628_s27 = sshll.u32 %s1284_s26, 3 }
  0x18   : > { %s144_s28 = ssub.s32 104, %s628_s27 }
  0x19   : > { %s145_s29 = sshll.u32 %s144_s28, 4 }
  0x1a   : > { %146 = vsyncadd %s1022_s30, %s145_s29  ;;  %p1025_p11 = scmp.ne.s32.totalorder %s628_s27, 0  ;;  %s660_s6 = smul.u32 104, %s915_s15 }
  0x1b   : > { %s1030_s7 = sshll.u32 %s138_s4, 4  ;;  %s632_s8 = sshll.u32 %s1284_s26, 7  ;;  %s154_s7 = int_to_ptr.vmem [resolvable:$true] %s1030_s7 }
  0x1c   : > { %s149_s11 = scalar_lea.hbm %s1267_s0, %s660_s6  ;;  %s812_s19 = sshrl.u32 %s632_s8, 4 }
  0x1d   : > { %s151_s12 = sshll.u32 %s149_s11, 4  ;;  %s821_s27 = scalar_lea.hbm %s1267_s0, 304  ;;  %s1037_s12 = int_to_ptr.hbm [resolvable:$true] %s151_s12 }
  0x1e   : > { %s810_s18 = sshra.s32 %s1037_s12, 4  ;;  %s811_s18 = int_to_ptr.hbm [resolvable:$true] %s810_s18 }
  0x1f   : > { %s817_s23 = scalar_lea.hbm %s811_s18, %s812_s19  ;;  %p822_p1 = scmp.lt.s32.totalorder %s811_s18, %s1267_s0 }
  0x20   : > { %p818_p12 = scmp.ne.s32.totalorder %s811_s18, %s817_s23  ;;  %p823_p2 = scmp.lt.s32.totalorder %s821_s27, %s817_s23 }
  0x22   : > { %p819_p13 = pnand %p818_p12, %p1025_p11  ;;  %p824_p3 = por %p823_p2, %p822_p1 }
  0x24   : > { %p820_p0 = pneg %p819_p13 }
  0x26   : > { %p825_p4 = pnand %p824_p3, %p820_p0 }
  0x28   : > { %828 = shalt.err (!%p825_p4)
}
  0x29   : > { %s829_s4 = sshra.s32 %s154_s7, 4  ;;  %s949_s9 = smov [#allocation2]   ;;  %s830_s4 = int_to_ptr.vmem [resolvable:$true] %s829_s4 }
  0x2a   : > { %s836_s6 = scalar_lea.vmem %s830_s4, %s812_s19  ;;  %s840_s10 = scalar_lea.vmem %s949_s9, 208 }
  0x2b   : > { %p837_p5 = scmp.ne.s32.totalorder %s830_s4, %s836_s6  ;;  %p842_p10 = scmp.lt.s32.totalorder %s840_s10, %s836_s6 }
  0x2d   : > { %p838_p6 = pnand %p837_p5, %p1025_p11 }
  0x2f   : > { %p839_p9 = pneg %p838_p6 }
  0x31   : > { %p844_p12 = pnand %p842_p10, %p839_p9 }
  0x33   : > { %847 = shalt.err (!%p844_p12)
}
  0x34   : > { %s950_s11 = smov 128   ;;  %s951_s18 = smov 8  }
  0x35   : > { %159 = dma.hbm_to_vmem [thread:$0]  (%p1025_p11), %s1037_s12, %s632_s8, %s154_s7, %s1022_s30, %s950_s11, %s950_s11, %s951_s18  }
  0x36 PF: > { %p633_p13 = scmp.ge.s32.totalorder %s915_s15, 1  ;;  %p161_p0 = scmp.lt.s32.totalorder %s915_s15, 4 }
  0x38   : > { %p162_p1 = pnand %p633_p13, %p161_p0 }
  0x39   : > { %s167_s19 = sand.u32 (!%p162_p1), 1, %s907_s13  }
  0x3a   : > { %165 = sbr.rel (%p162_p1) target bundleno = 310 (0x136), region = 32  ;;  %s168_s24 = scalar_lea.sflag (!%p162_p1), [#allocation3], %s167_s19 }
  0x3b   : > { %s1065_s23 = smul.u32 (!%p162_p1), 104, %s167_s19 }
  0x3d   : > { %s1068_s25 = scalar_lea.vmem (!%p162_p1), [#allocation2], %s1065_s23 }
  0x3f   : > { %898 = dma.done.wait (%p1008_p7), %s168_s24, 1664  }
  0x40   : > { %900 = vsyncadd (%p1008_p7), %s168_s24, 4294965632  ;;  %vm274_vm0 = vcmask 1043456   ;;  %v229_v0 = vld [vmem:[%s1268_s1 + $0x60] sm:$0xf]  ;;  %v228_v1 = vld [vmem:[%s1268_s1 + $0x58] sm:$0xff]  ;;  %vm234_vm1 = vcmask 818176  }
  0x41   : > { %663 = vmatpush.msk.msra.mxu2 %vm274_vm0, %v229_v0  ;;  %664 = vmatpush.msk.msra.mxu3 %vm274_vm0, %v229_v0  ;;  %v227_v2 = vld [vmem:[%s1268_s1 + $0x50] sm:$0xff]  ;;  %v226_v3 = vld [vmem:[%s1268_s1 + $0x48] sm:$0xff]  ;;  %v225_v4 = vld [vmem:[%s1268_s1 + $0x40] sm:$0xff]  ;;  %vm334_vm2 = vcmask 80896   ;;  %s1143_s28 = scalar_lea.vmem [#allocation4], %s1065_s23   ;;  %s355_s23 = smul.u32 (%p1012_p8), 13, %s991_s16 }
  0x42   : > { %662 = vmatpush.msk.msra.mxu1 %vm274_vm0, %v229_v0  ;;  %634 = vmatpush.msk.msra.mxu0 %vm274_vm0, %v229_v0  ;;  %v224_v5 = vld [vmem:[%s1268_s1 + $0x38] sm:$0xff]  ;;  %v223_v6 = vld [vmem:[%s1268_s1 + $0x30] sm:$0xff]  ;;  %v222_v7 = vld [vmem:[%s1268_s1 + $0x28] sm:$0xff] }
  0x43   : > { %666 = vmatpush.msra.mxu2 %v228_v1  ;;  %667 = vmatpush.msra.mxu3 %v228_v1  ;;  %v221_v8 = vld [vmem:[%s1268_s1 + $0x20] sm:$0xff]  ;;  %v220_v9 = vld [vmem:[%s1268_s1 + $0x18] sm:$0xff]  ;;  %v219_v10 = vld [vmem:[%s1268_s1 + $0x10] sm:$0xff]  ;;  %s356_s29 = ssub.s32 (%p1012_p8), 38, %s355_s23 }
  0x44   : > { %665 = vmatpush.msra.mxu1 %v228_v1  ;;  %282 = vmatpush.msra.mxu0 %v228_v1  ;;  %v218_v11 = vld [vmem:[%s1268_s1 + $0x8] sm:$0xff]  ;;  %v217_v12 = vld [vmem:[%s1268_s1] sm:$0xff]  ;;  %v206_v15 = vld [vmem:[%s1068_s25 + $0x10] sm:$0xff]  ;;  %p357_p7 = scmp.lt.s32.totalorder (%p1012_p8), %s356_s29, 13 }
  0x45   : > { %669 = vmatpush.msra.mxu2 %v227_v2  ;;  %670 = vmatpush.msra.mxu3 %v227_v2  ;;  %v209_v13 = vld [vmem:[%s1068_s25 + $0x28] sm:$0xff]  ;;  %v204_v16 = vld [vmem:[%s1068_s25] sm:$0xff]  ;;  %v210_v17 = vld [vmem:[%s1068_s25 + $0x30] sm:$0xff] }
  0x46   : > { %668 = vmatpush.msra.mxu1 %v227_v2  ;;  %283 = vmatpush.msra.mxu0 %v227_v2  ;;  %v213_v14 = vld [vmem:[%s1068_s25 + $0x48] sm:$0xff]  ;;  %v214_v18 = vld [vmem:[%s1068_s25 + $0x50] sm:$0xff]  ;;  %v207_v19 = vld [vmem:[%s1068_s25 + $0x18] sm:$0xff] }
  0x47   : > { %672 = vmatpush.msra.mxu2 %v226_v3  ;;  %673 = vmatpush.msra.mxu3 %v226_v3  ;;  %v205_v20 = vld [vmem:[%s1068_s25 + $0x8] sm:$0xff]  ;;  %v211_v21 = vld [vmem:[%s1068_s25 + $0x38] sm:$0xff]  ;;  %v208_v23 = vld [vmem:[%s1068_s25 + $0x20] sm:$0xff] }
  0x48   : > { %671 = vmatpush.msra.mxu1 %v226_v3  ;;  %284 = vmatpush.msra.mxu0 %v226_v3  ;;  %v215_v22 = vld [vmem:[%s1068_s25 + $0x58] sm:$0xff]  ;;  %v212_v24 = vld [vmem:[%s1068_s25 + $0x40] sm:$0xff] }
  0x49   : > { %675 = vmatpush.msra.mxu2 %v225_v4  ;;  %676 = vmatpush.msra.mxu3 %v225_v4  ;;  %v216_v25 = vld [vmem:[%s1068_s25 + $0x60] sm:$0xff]  ;;  %s661_s25 = smul.u32 (%p1012_p8), 104, %s991_s16 }
  0x4a   : > { %674 = vmatpush.msra.mxu1 %v225_v4  ;;  %285 = vmatpush.msra.mxu0 %v225_v4  ;;  %v803_v26 = vld [vmem:[%s1269_s2] ss:$0 sm:$0xff] }
  0x4b   : > { %678 = vmatpush.msra.mxu2 %v224_v5  ;;  %679 = vmatpush.msra.mxu3 %v224_v5  ;;  %s1178_s9 = scalar_lea.vmem (%p1012_p8), %s1270_s3, %s661_s25  }
  0x4c   : > { %677 = vmatpush.msra.mxu1 %v224_v5  ;;  %286 = vmatpush.msra.mxu0 %v224_v5 }
  0x4d   : > { %681 = vmatpush.msra.mxu2 %v223_v6  ;;  %682 = vmatpush.msra.mxu3 %v223_v6 }
  0x4e   : > { %680 = vmatpush.msra.mxu1 %v223_v6  ;;  %287 = vmatpush.msra.mxu0 %v223_v6 }
  0x4f   : > { %684 = vmatpush.msra.mxu2 %v222_v7  ;;  %685 = vmatpush.msra.mxu3 %v222_v7 }
  0x50   : > { %683 = vmatpush.msra.mxu1 %v222_v7  ;;  %288 = vmatpush.msra.mxu0 %v222_v7 }
  0x51   : > { %687 = vmatpush.msra.mxu2 %v221_v8  ;;  %688 = vmatpush.msra.mxu3 %v221_v8 }
  0x52   : > { %686 = vmatpush.msra.mxu1 %v221_v8  ;;  %289 = vmatpush.msra.mxu0 %v221_v8 }
  0x53   : > { %690 = vmatpush.msra.mxu2 %v220_v9  ;;  %691 = vmatpush.msra.mxu3 %v220_v9 }
  0x54   : > { %689 = vmatpush.msra.mxu1 %v220_v9  ;;  %290 = vmatpush.msra.mxu0 %v220_v9 }
  0x55   : > { %693 = vmatpush.msra.mxu2 %v219_v10  ;;  %694 = vmatpush.msra.mxu3 %v219_v10 }
  0x56   : > { %692 = vmatpush.msra.mxu1 %v219_v10  ;;  %291 = vmatpush.msra.mxu0 %v219_v10 }
  0x57   : > { %696 = vmatpush.msra.mxu2 %v218_v11  ;;  %697 = vmatpush.msra.mxu3 %v218_v11 }
  0x58   : > { %695 = vmatpush.msra.mxu1 %v218_v11  ;;  %292 = vmatpush.msra.mxu0 %v218_v11 }
  0x59   : > { %699 = vmatpush.msra.mxu2 %v217_v12  ;;  %700 = vmatpush.msra.mxu3 %v217_v12 }
  0x5a   : > { %640 = vmatmul.msk.f32.vlgmr.msra.gmra.mxu2 %vm234_vm1, %v209_v13  ;;  %644 = vmatmul.msk.f32.vlgmr.msra.gmra.mxu3 %vm234_vm1, %v213_v14 }
  0x5b   : > { %698 = vmatpush.msra.mxu1 %v217_v12  ;;  %293 = vmatpush.msra.mxu0 %v217_v12 }
  0x5c   : > { %637 = vmatmul.msk.f32.vlgmr.msra.gmra.mxu1 %vm234_vm1, %v206_v15  ;;  %635 = vmatmul.msk.f32.vlgmr.msra.gmra.mxu0 %vm234_vm1, %v204_v16 }
  0x62   : > { %641 = vmatmul.msk.f32.gmra.mxu2 %vm234_vm1, %v210_v17  ;;  %645 = vmatmul.msk.f32.gmra.mxu3 %vm234_vm1, %v214_v18 }
  0x64   : > { %638 = vmatmul.msk.f32.gmra.mxu1 %vm234_vm1, %v207_v19  ;;  %636 = vmatmul.msk.f32.gmra.mxu0 %vm234_vm1, %v205_v20 }
  0x6a   : > { %642 = vmatmul.msk.f32.gmra.mxu2 %vm234_vm1, %v211_v21  ;;  %646 = vmatmul.msk.f32.gmra.mxu3 %vm234_vm1, %v215_v22 }
  0x6c   : > { %639 = vmatmul.msk.f32.gmra.mxu1 %vm234_vm1, %v208_v23 }
  0x72   : > { %643 = vmatmul.msk.f32.gmra.mxu2 %vm234_vm1, %v212_v24  ;;  %647 = vmatmul.msk.f32.gmra.mxu3 %vm234_vm1, %v216_v25 }
  0xd9   : > { %v301_v27 = vpop.f32.mrf.mxu1  ;;  %v295_v28 = vpop.f32.mrf.mxu0 }
  0xda   : > { %v302_v29 = vadd.f32 %v803_v26, %v301_v27  ;;  %v296_v30 = vadd.f32 %v803_v26, %v295_v28 }
  0xdc   : > { %337 = vst.msk [vmem:[%s1143_s28 + $0x10] sm:$0xff] %vm334_vm2, %v302_v29 }
  0xdd   : > { %v310_v31 = vpop.f32.mrf.mxu2  ;;  %v322_v32 = vpop.f32.mrf.mxu3  ;;  %335 = vst.msk [vmem:[%s1143_s28] sm:$0xff] %vm334_vm2, %v296_v30 }
  0xde   : > { %v311_v33 = vadd.f32 %v803_v26, %v310_v31  ;;  %v323_v34 = vadd.f32 %v803_v26, %v322_v32 }
  0xe0   : > { %340 = vst.msk [vmem:[%s1143_s28 + $0x28] sm:$0xff] %vm334_vm2, %v311_v33 }
  0xe1   : > { %344 = vst.msk [vmem:[%s1143_s28 + $0x48] sm:$0xff] %vm334_vm2, %v323_v34  ;;  %v304_v35 = vpop.f32.mrf.mxu1  ;;  %v298_v36 = vpop.f32.mrf.mxu0 }
  0xe2   : > { %v305_v37 = vadd.f32 %v803_v26, %v304_v35  ;;  %v299_v38 = vadd.f32 %v803_v26, %v298_v36 }
  0xe4   : > { %338 = vst.msk [vmem:[%s1143_s28 + $0x18] sm:$0xff] %vm334_vm2, %v305_v37 }
  0xe5   : > { %v313_v39 = vpop.f32.mrf.mxu2  ;;  %v325_v40 = vpop.f32.mrf.mxu3  ;;  %336 = vst.msk [vmem:[%s1143_s28 + $0x8] sm:$0xff] %vm334_vm2, %v299_v38 }
  0xe6   : > { %v314_v41 = vadd.f32 %v803_v26, %v313_v39  ;;  %v326_v42 = vadd.f32 %v803_v26, %v325_v40 }
  0xe8   : > { %341 = vst.msk [vmem:[%s1143_s28 + $0x30] sm:$0xff] %vm334_vm2, %v314_v41 }
  0xe9   : > { %345 = vst.msk [vmem:[%s1143_s28 + $0x50] sm:$0xff] %vm334_vm2, %v326_v42  ;;  %v307_v43 = vpop.f32.mrf.mxu1 }
  0xea   : > { %v308_v44 = vadd.f32 %v803_v26, %v307_v43 }
  0xec   : > { %339 = vst.msk [vmem:[%s1143_s28 + $0x20] sm:$0xff] %vm334_vm2, %v308_v44 }
  0xed   : > { %v316_v45 = vpop.f32.mrf.mxu2  ;;  %v328_v46 = vpop.f32.mrf.mxu3 }
  0xee   : > { %v317_v47 = vadd.f32 %v803_v26, %v316_v45  ;;  %v329_v48 = vadd.f32 %v803_v26, %v328_v46 }
  0xf0   : > { %342 = vst.msk [vmem:[%s1143_s28 + $0x38] sm:$0xff] %vm334_vm2, %v317_v47 }
  0xf1   : > { %346 = vst.msk [vmem:[%s1143_s28 + $0x58] sm:$0xff] %vm334_vm2, %v329_v48 }
  0xf5   : > { %v319_v49 = vpop.f32.mrf.mxu2  ;;  %v331_v50 = vpop.f32.mrf.mxu3  ;;  %354 = sbr.rel (!%p1012_p8) target bundleno = 310 (0x136), region = 40 }
  0xf6   : > { %v320_v51 = vadd.f32 %v803_v26, %v319_v49  ;;  %v332_v52 = vadd.f32 %v803_v26, %v331_v50 }
  0xf8   : > { %343 = vst.msk [vmem:[%s1143_s28 + $0x40] sm:$0xff] %vm334_vm2, %v320_v51 }
  0xf9   : > { %347 = vst.msk [vmem:[%s1143_s28 + $0x60] sm:$0xff] %vm334_vm2, %v332_v52 }
  0xfa   : > { %s1286_s29 = smov (!%p357_p7, %s356_s29), 13 }
  0xfb   : > { %s648_s10 = sshll.u32 %s1286_s29, 3 }
  0xfc   : > { %p651_p11 = scmp.eq.s32.totalorder %s648_s10, 0 }
  0xfd   : > { %804 = sdivrem.u32 (!%p651_p11), %s1286_s29, 13 }
  0xfe   : > { %365 = sbr.rel (%p651_p11) target bundleno = 310 (0x136), region = 44 }
 0x106   : > { %s1184_s22 = spop.drf %804 }
 0x107   : > { %s806_s11 = spop.drf %804  ;;  %p652_p8 = scmp.le.s32.totalorder %s1184_s22, 0 }
 0x108   : > { %s1274_s16 = smov (!%p652_p8), %s1178_s9  ;;  %s1275_s18 = smov (!%p652_p8), %s1143_s28 }
 0x109   : > { %578 = sbr.rel (%p652_p8) target bundleno = 284 (0x11c), region = 126  ;;  %s1193_s19 = smov (!%p652_p8), 0  }
 0x10a   : > { %s1195_s24 = smov (!%p652_p8), 0  }
 0x10e LB: >> { %v454_v53 = vld [vmem:[%s923_s18] sm:$0xff]  ;;  %v456_v54 = vld [vmem:[%s923_s18 + $0x8] sm:$0xff]  ;;  %v458_v55 = vld [vmem:[%s923_s18 + $0x10] sm:$0xff]  ;;  %s480_s26 = sadd.s32 1, %s927_s19  ;;  %s448_s24 = sadd.s32 1, %s931_s24   ;;  %s931_s24 = sphi %s1195_s24, %s448_s24   ;;  %s927_s19 = sphi %s1193_s19, %s1278_s19   ;;  %s923_s18 = sphi %s1275_s18, %s1277_s18   ;;  %s919_s16 = sphi %s1274_s16, %s1276_s16  }
 0x10f   : >> { %455 = vst [vmem:[%s919_s16] sm:$0xff] %v454_v53  ;;  %v460_v56 = vld [vmem:[%s923_s18 + $0x18] sm:$0xff]  ;;  %p481_p2 = scmp.ge.s32.totalorder %s480_s26, %s1184_s22  ;;  %v462_v57 = vld [vmem:[%s923_s18 + $0x20] sm:$0xff]  ;;  %v464_v58 = vld [vmem:[%s923_s18 + $0x28] sm:$0xff]  ;;  %p447_p3 = scmp.ge.s32.totalorder %s448_s24, %s1184_s22 }
 0x110   : >> { %457 = vst [vmem:[%s919_s16 + $0x8] sm:$0xff] %v456_v54  ;;  %v466_v59 = vld [vmem:[%s923_s18 + $0x30] sm:$0xff]  ;;  %v468_v60 = vld [vmem:[%s923_s18 + $0x38] sm:$0xff]  ;;  %v470_v61 = vld [vmem:[%s923_s18 + $0x40] sm:$0xff] }
 0x111   : >> { %459 = vst [vmem:[%s919_s16 + $0x10] sm:$0xff] %v458_v55  ;;  %s1288_s26 = smov (%p481_p2, %s480_s26), 0  ;;  %v472_v62 = vld [vmem:[%s923_s18 + $0x48] sm:$0xff]  ;;  %v474_v63 = vld [vmem:[%s923_s18 + $0x50] sm:$0xff]  ;;  %v476_v0 = vld [vmem:[%s923_s18 + $0x58] sm:$0xff] }
 0x112   : >> { %461 = vst [vmem:[%s919_s16 + $0x18] sm:$0xff] %v460_v56  ;;  %s483_s30 = smul.u32 104, %s1288_s26  ;;  %v478_v1 = vld [vmem:[%s923_s18 + $0x60] sm:$0xff]  ;;  %s1278_s19 = smov %s1288_s26 }
 0x113   : >> { %463 = vst [vmem:[%s919_s16 + $0x20] sm:$0xff] %v462_v57 }
 0x114   : >> { %465 = vst [vmem:[%s919_s16 + $0x28] sm:$0xff] %v464_v58  ;;  %s485_s15 = scalar_lea.vmem %s1143_s28, %s483_s30 [#allocation4]   ;;  %s486_s5 = scalar_lea.vmem %s1178_s9, %s483_s30  }
 0x115   : >> { %467 = vst [vmem:[%s919_s16 + $0x30] sm:$0xff] %v466_v59  ;;  %s1277_s18 = smov %s485_s15 }
 0x116   : >> { %469 = vst [vmem:[%s919_s16 + $0x38] sm:$0xff] %v468_v60 }
 0x117   : >> { %471 = vst [vmem:[%s919_s16 + $0x40] sm:$0xff] %v470_v61  ;;  %450 = sbr.rel (!%p447_p3) target bundleno = 270 (0x10e), region = 132 }
 0x118   : >> { %473 = vst [vmem:[%s919_s16 + $0x48] sm:$0xff] %v472_v62 }
 0x119   : >> { %475 = vst [vmem:[%s919_s16 + $0x50] sm:$0xff] %v474_v63 }
 0x11a   : >> { %477 = vst [vmem:[%s919_s16 + $0x58] sm:$0xff] %v476_v0 }
 0x11b   : >> { %479 = vst [vmem:[%s919_s16 + $0x60] sm:$0xff] %v478_v1  ;;  %s1276_s16 = smov %s486_s5 }
 0x11c PF: > { %807 = sdivrem.u32 %s1286_s29, 13 }
 0x11d   : > { %s653_s7 = smul.u32 104, %s1184_s22 }
 0x11f   : > { %s1249_s8 = scalar_lea.vmem %s1143_s28, %s653_s7 [#allocation4]   ;;  %s493_s21 = scalar_lea.vmem %s1178_s9, %s653_s7  }
 0x125   : > { %s808_s12 = spop.drf %807 }
 0x126   : > { %s809_s27 = spop.drf %807 }
 0x127   : > { %p655_p4 = scmp.le.s32.totalorder %s809_s27, 0 }
 0x128   : > { %s933_s23 = smov (!%p655_p4), %s493_s21   ;;  %s937_s25 = smov (!%p655_p4), %s1249_s8  }
 0x129   : > { %592 = sbr.rel (%p655_p4) target bundleno = 310 (0x136), region = 137  ;;  %s941_s4 = smov (!%p655_p4), 0  }
 0x12a   : > { %s945_s6 = smov (!%p655_p4), 0  }
 0x12e LB: >> { %v503_v2 = vld [vmem:[%s939_s25] sm:$0xff]  ;;  %s505_s28 = sadd.s32 1, %s943_s4  ;;  %s497_s6 = sadd.s32 1, %s947_s6   ;;  %s947_s6 = sphi %s945_s6, %s497_s6   ;;  %s943_s4 = sphi %s941_s4, %s942_s4   ;;  %s939_s25 = sphi %s937_s25, %s510_s25   ;;  %s935_s23 = sphi %s933_s23, %s511_s23  }
 0x12f   : >> { %504 = vst [vmem:[%s935_s23] sm:$0xff] %v503_v2  ;;  %p506_p5 = scmp.ge.s32.totalorder %s505_s28, %s809_s27  ;;  %p496_p6 = scmp.ge.s32.totalorder %s497_s6, %s809_s27 }
 0x131   : >> { %s1290_s28 = smov (%p506_p5, %s505_s28), 0  ;;  %499 = sbr.rel (!%p496_p6) target bundleno = 302 (0x12e), region = 143 }
 0x132   : >> { %s656_s29 = sshll.u32 %s1290_s28, 3  ;;  %s942_s4 = smov %s1290_s28  }
 0x133   : >> { %s510_s25 = scalar_lea.vmem %s1249_s8, %s656_s29 [#allocation4]   ;;  %s511_s23 = scalar_lea.vmem %s493_s21, %s656_s29  }
 0x136 PF: > { %p13_p9 = scmp.ge.s32.totalorder %s994_s17, 5   ;;  %s1279_s12 = smov %s907_s13 }
 0x137   : > { %s1280_s13 = smov %s911_s14  ;;  %s1281_s14 = smov %s1004_s20 }
 0x138   : > { %s1282_s15 = smov %s994_s17  ;;  %15 = sbr.rel (!%p13_p9) target bundleno = 3 (0x3), region = 154 }
 0x13d   :  { %527 = vsyncpa [#allocation3], 1 }
 0x13e   :  { %529 = vsyncpa [#allocation3 + $0x1], 1 }

</bundles_post_ra>
